<compile_context>
chip_gen: v7x
topology: tpu7x:2x2x1
jax: 0.10.0
libtpu: 0.0.40
codegen_flags: <defaults>
</compile_context>

<pallas_src>
import jax
import jax.numpy as jnp
from jax import lax
from jax.experimental import pallas as pl
from jax.experimental.pallas import tpu as pltpu

LANE = 128


def _round_up(v, m):
    return ((v + m - 1) // m) * m


# ---------------------------------------------------------------------------
# Wrapper + fused kernel (kernel is a closure so it can capture N, tile sizes)
# ---------------------------------------------------------------------------
def node_attention(x, weight, bias, edge_index, edge_attr, *, edge_tile_rows=None):
    """x: [N, D] f32; weight: [1, D]; bias: [1]; edge_index: [2, E] int32; edge_attr: [E] f32."""
    N, D = x.shape
    E = edge_index.shape[1]

    n_pad = _round_up(max(N, 8), 8)
    d_pad = _round_up(max(D, LANE), LANE)

    rows_needed = pl.cdiv(E, LANE)
    if edge_tile_rows is None:
        # Up to 256 sublanes (32K edges) per grid step; small graphs use 1 tile.
        edge_tile_rows = min(256, _round_up(rows_needed, 8))
    edge_tile_rows = _round_up(edge_tile_rows, 8)
    total_rows = _round_up(rows_needed, edge_tile_rows)
    e_pad = total_rows * LANE
    num_tiles = total_rows // edge_tile_rows

    # ---- pad / re-layout inputs (lane+sublane dense edge arrays) ----
    x_p = jnp.zeros((n_pad, d_pad), jnp.float32).at[:N, :D].set(x.astype(jnp.float32))
    w_p = jnp.zeros((1, d_pad), jnp.float32).at[:, :D].set(
        weight.reshape(1, D).astype(jnp.float32))
    b_p = bias.reshape(1, 1).astype(jnp.float32)

    # Pad edges use row/col = -1 sentinels (never match a node id) and attr = 0.
    row_p = (jnp.full((e_pad,), -1, jnp.int32)
             .at[:E].set(edge_index[0].astype(jnp.int32))
             .reshape(total_rows, LANE))
    col_p = (jnp.full((e_pad,), -1, jnp.int32)
             .at[:E].set(edge_index[1].astype(jnp.int32))
             .reshape(total_rows, LANE))
    attr_p = (jnp.zeros((e_pad,), jnp.float32)
              .at[:E].set(edge_attr.astype(jnp.float32))
              .reshape(total_rows, LANE))

    def fused_kernel(x_ref, w_ref, b_ref, row_ref, col_ref, attr_ref,
                     out_ref, invdeg_rep, diag_rep, gcol):
        p = pl.program_id(0)          # 0: node precompute, 1: edge pass
        i = pl.program_id(1)          # edge tile
        last = pl.num_programs(1) - 1

        # ------------------ phase 0: degree histogram + node epilogue --------
        @pl.when(p == 0)
        def _phase0():
            @pl.when(i == 0)
            def _():
                invdeg_rep[...] = jnp.zeros_like(invdeg_rep)   # per-(node,lane) partial counts

            row_t = row_ref[...]                                # [TS, 128] int32

            def deg_body(n, carry):
                # per-lane partial count of edges with row == n in this tile
                hit = jnp.where(row_t == n, 1.0, 0.0)                      # [TS,128]
                part = jnp.sum(hit, axis=0, keepdims=True)                 # [1,128]
                invdeg_rep[pl.ds(n, 1), :] = invdeg_rep[pl.ds(n, 1), :] + part
                return carry
            lax.fori_loop(0, N, deg_body, 0)

            @pl.when(i == last)
            def _():
                # diag = sigmoid(x @ W^T + b). D is small -> VPU multiply + lane
                # reduce; use an MXU jnp.dot when in_feat >~ 128.
                logits = jnp.sum(x_ref[...] * w_ref[...], axis=1, keepdims=True) + b_ref[...]
                diag_col = jax.nn.sigmoid(logits)                          # [n_pad,1]
                diag_rep[...] = jnp.broadcast_to(diag_col, diag_rep.shape)  # lane-replicate

                deg_col = jnp.sum(invdeg_rep[...], axis=1, keepdims=True)  # [n_pad,1]
                # Exact reciprocal (review: keep exact); 0 for isolated nodes.
                inv_col = jnp.where(deg_col > 0.0, 1.0 / deg_col, 0.0)
                invdeg_rep[...] = jnp.broadcast_to(inv_col, invdeg_rep.shape)

        # ------------------ phase 1: per-edge output --------------------------
        @pl.when(p == 1)
        def _phase1():
            row_t = row_ref[...]                                # [TS,128] int32
            col_t = col_ref[...]                                # [TS,128] int32
            gcol[...] = jnp.zeros_like(gcol)                    # diag[col] accumulator
            out_ref[...] = jnp.zeros_like(out_ref)              # inv_deg[row] accumulator

            def gather_body(n, carry):
                d_vec = diag_rep[pl.ds(n, 1), :]                # [1,128]: diag[n] in every lane
                v_vec = invdeg_rep[pl.ds(n, 1), :]              # [1,128]: 1/deg[n] in every lane
                gcol[...] = jnp.where(col_t == n, d_vec, gcol[...])
                out_ref[...] = jnp.where(row_t == n, v_vec, out_ref[...])
                return carry
            lax.fori_loop(0, N, gather_body, 0)

            out_ref[...] = attr_ref[...] * gcol[...] * out_ref[...]

    vmem_limit = 32 * 1024 * 1024   # plenty for these tiles; safe on v5e/v6e/v7x
    cparams = pltpu.CompilerParams(
        dimension_semantics=("arbitrary", "arbitrary"),   # phase 1 depends on phase 0
        vmem_limit_bytes=vmem_limit)

    out_tiles = pl.pallas_call(
        fused_kernel,
        out_shape=jax.ShapeDtypeStruct((total_rows, LANE), jnp.float32),
        grid_spec=pltpu.PrefetchScalarGridSpec(
            num_scalar_prefetch=0,
            grid=(2, num_tiles),
            in_specs=[
                pl.BlockSpec((n_pad, d_pad), lambda p, i: (0, 0)),              # x (resident)
                pl.BlockSpec((1, d_pad), lambda p, i: (0, 0)),                  # weight
                pl.BlockSpec((1, 1), lambda p, i: (0, 0)),                      # bias
                pl.BlockSpec((edge_tile_rows, LANE), lambda p, i: (i, 0)),      # row (both phases)
                pl.BlockSpec((edge_tile_rows, LANE), lambda p, i: (i * p, 0)),  # col (phase 1 only)
                pl.BlockSpec((edge_tile_rows, LANE), lambda p, i: (i * p, 0)),  # attr (phase 1 only)
            ],
            # Pinned to block 0 during phase 0 (no garbage writebacks), walks
            # the lane-dense [TS,128] blocks during phase 1.
            out_specs=pl.BlockSpec((edge_tile_rows, LANE), lambda p, i: (i * p, 0)),
            scratch_shapes=[
                pltpu.VMEM((n_pad, LANE), jnp.float32),   # deg partials -> inv_deg (lane-replicated)
                pltpu.VMEM((n_pad, LANE), jnp.float32),   # diag (lane-replicated)
                pltpu.VMEM((edge_tile_rows, LANE), jnp.float32),  # diag[col] accumulator
            ],
        ),
        compiler_params=cparams,
    )(x_p, w_p, b_p, row_p, col_p, attr_p)

    adj_mat_val = out_tiles.reshape(e_pad)[:E]
    return edge_index, adj_mat_val


def node_attention_reference(x, weight, bias, edge_index, edge_attr):
    """Pure-JAX reference of the PyTorch forward."""
    N = x.shape[0]
    diag = jax.nn.sigmoid(x @ weight.T + bias).reshape(-1)          # [N]
    row, col = edge_index[0], edge_index[1]
    deg = jnp.zeros((N,), jnp.float32).at[row].add(1.0)
    return edge_index, (1.0 / deg[row]) * edge_attr * diag[col]


if __name__ == "__main__":
    key = jax.random.PRNGKey(0)
    N, D, E = 64, 32, 128   # nodes, in_feat, edges

    k_x, k_w, k_b, k_e, k_a = jax.random.split(key, 5)
    x = jax.random.normal(k_x, (N, D), jnp.float32)
    weight = jax.random.normal(k_w, (1, D), jnp.float32) * 0.1      # nn.Linear(in_feat, 1).weight
    bias = jax.random.normal(k_b, (1,), jnp.float32) * 0.1          # nn.Linear(in_feat, 1).bias

    # E distinct (row, col) pairs so spspmm(coalesce=True) semantics match exactly.
    flat = jax.random.choice(k_e, N * N, shape=(E,), replace=False)
    edge_index = jnp.stack([flat // N, flat % N]).astype(jnp.int32)  # [2, E]
    edge_attr = jax.random.uniform(k_a, (E,), jnp.float32) + 0.1

    (_, val) = node_attention(x, weight, bias, edge_index, edge_attr)
    val = jax.block_until_ready(val)

    (_, val_ref) = node_attention_reference(x, weight, bias, edge_index, edge_attr)
    assert jnp.allclose(val, val_ref, rtol=1e-5, atol=1e-5), "mismatch vs reference"

    print("KERNEL_OK")
</pallas_src>

<mosaic_0001>
module attributes {stable_mosaic.version = 11 : i64} {
  func.func @fused_kernel(%arg0: i32, %arg1: i32, %arg2: memref<64x128xf32, #tpu.memory_space<vmem>>, %arg3: memref<1x128xf32, #tpu.memory_space<vmem>>, %arg4: memref<1x1xf32, #tpu.memory_space<vmem>>, %arg5: memref<8x128xi32, #tpu.memory_space<vmem>>, %arg6: memref<8x128xi32, #tpu.memory_space<vmem>>, %arg7: memref<8x128xf32, #tpu.memory_space<vmem>>, %arg8: memref<8x128xf32, #tpu.memory_space<vmem>>, %arg9: memref<64x128xf32, #tpu.memory_space<vmem>>, %arg10: memref<64x128xf32, #tpu.memory_space<vmem>>, %arg11: memref<8x128xf32, #tpu.memory_space<vmem>>) attributes {dimension_semantics = [#tpu.dimension_semantics<arbitrary>, #tpu.dimension_semantics<arbitrary>], iteration_bounds = array<i64: 2, 1>, scalar_prefetch = 0 : i64, scratch_operands = 3 : i64, tpu.core_type = #tpu.core_type<tc>, window_params = [{pipeline_mode = #tpu.pipeline_mode<synchronous>, transform_indices = @transform_0, window_bounds = array<i64: 64, 128>}, {pipeline_mode = #tpu.pipeline_mode<synchronous>, transform_indices = @transform_1, window_bounds = array<i64: 1, 128>}, {pipeline_mode = #tpu.pipeline_mode<synchronous>, transform_indices = @transform_2, window_bounds = array<i64: 1, 1>}, {transform_indices = @transform_3, window_bounds = array<i64: 8, 128>}, {transform_indices = @transform_4, window_bounds = array<i64: 8, 128>}, {transform_indices = @transform_5, window_bounds = array<i64: 8, 128>}, {transform_indices = @transform_6, window_bounds = array<i64: 8, 128>}]} {
    %c0_i32 = arith.constant 0 : i32
    %0 = arith.cmpi eq, %arg0, %c0_i32 : i32
    %1 = arith.extui %0 : i1 to i32
    %c0_i32_0 = arith.constant 0 : i32
    %2 = arith.cmpi ne, %1, %c0_i32_0 : i32
    scf.if %2 {
      %c0_i32_2 = arith.constant 0 : i32
      %6 = arith.cmpi eq, %arg1, %c0_i32_2 : i32
      %7 = arith.extui %6 : i1 to i32
      %c0_i32_3 = arith.constant 0 : i32
      %8 = arith.cmpi ne, %7, %c0_i32_3 : i32
      scf.if %8 {
        %cst = arith.constant 0.000000e+00 : f32
        %14 = vector.broadcast %cst : f32 to vector<64x128xf32>
        %c0_10 = arith.constant 0 : index
        %c0_11 = arith.constant 0 : index
        %15 = vector.load %arg9[%c0_10, %c0_11] : memref<64x128xf32, #tpu.memory_space<vmem>>, vector<64x128xf32>
        tpu.vector_store %arg9[%c0_10, %c0_11], %14 {strides = array<i32>} : memref<64x128xf32, #tpu.memory_space<vmem>>, vector<64x128xf32>,
      } else {
      }
      %c0 = arith.constant 0 : index
      %c0_4 = arith.constant 0 : index
      %9 = vector.load %arg5[%c0, %c0_4] : memref<8x128xi32, #tpu.memory_space<vmem>>, vector<8x128xi32>
      %c0_i32_5 = arith.constant 0 : i32
      %c64_i32 = arith.constant 64 : i32
      %10 = arith.addi %c0_i32_5, %c64_i32 : i32
      %c1_i32_6 = arith.constant 1 : i32
      scf.for %arg12 = %c0_i32_5 to %10 step %c1_i32_6  : i32 {
        %14 = vector.broadcast %arg12 : i32 to vector<8x128xi32>
        %15 = arith.cmpi eq, %9, %14 : vector<8x128xi32>
        %cst = arith.constant 1.000000e+00 : f32
        %cst_10 = arith.constant 0.000000e+00 : f32
        %16 = vector.broadcast %cst : f32 to vector<8x128xf32>
        %17 = vector.broadcast %cst_10 : f32 to vector<8x128xf32>
        %18 = arith.select %15, %16, %17 : vector<8x128xi1>, vector<8x128xf32>
        %cst_11 = arith.constant dense<0.000000e+00> : vector<128xf32>
        %19 = vector.multi_reduction <add>, %18, %cst_11 [0] : vector<8x128xf32> to vector<128xf32>
        %20 = vector.shape_cast %19 : vector<128xf32> to vector<1x128xf32>
        %21 = arith.index_cast %arg12 : i32 to index
        %c0_12 = arith.constant 0 : index
        %22 = vector.load %arg9[%21, %c0_12] : memref<64x128xf32, #tpu.memory_space<vmem>>, vector<1x128xf32>
        %23 = arith.addf %22, %20 : vector<1x128xf32>
        %24 = arith.index_cast %arg12 : i32 to index
        %c0_13 = arith.constant 0 : index
        %25 = vector.load %arg9[%24, %c0_13] : memref<64x128xf32, #tpu.memory_space<vmem>>, vector<1x128xf32>
        tpu.vector_store %arg9[%24, %c0_13], %23 {strides = array<i32>} : memref<64x128xf32, #tpu.memory_space<vmem>>, vector<1x128xf32>,
      }
      %c64_i32_7 = arith.constant 64 : i32
      %c0_i32_8 = arith.constant 0 : i32
      %11 = arith.cmpi eq, %arg1, %c0_i32_8 : i32
      %12 = arith.extui %11 : i1 to i32
      %c0_i32_9 = arith.constant 0 : i32
      %13 = arith.cmpi ne, %12, %c0_i32_9 : i32
      scf.if %13 {
        %c0_10 = arith.constant 0 : index
        %c0_11 = arith.constant 0 : index
        %14 = vector.load %arg2[%c0_10, %c0_11] : memref<64x128xf32, #tpu.memory_space<vmem>>, vector<64x128xf32>
        %c0_12 = arith.constant 0 : index
        %c0_13 = arith.constant 0 : index
        %15 = vector.load %arg3[%c0_12, %c0_13] : memref<1x128xf32, #tpu.memory_space<vmem>>, vector<1x128xf32>
        %16 = vector.broadcast %15 : vector<1x128xf32> to vector<64x128xf32>
        %17 = arith.mulf %14, %16 : vector<64x128xf32>
        %cst = arith.constant dense<0.000000e+00> : vector<64xf32>
        %18 = vector.multi_reduction <add>, %17, %cst [1] : vector<64x128xf32> to vector<64xf32>
        %19 = vector.shape_cast %18 : vector<64xf32> to vector<64x1xf32>
        %c0_14 = arith.constant 0 : index
        %c0_15 = arith.constant 0 : index
        %20 = vector.load %arg4[%c0_14, %c0_15] : memref<1x1xf32, #tpu.memory_space<vmem>>, vector<1x1xf32>
        %21 = vector.broadcast %20 : vector<1x1xf32> to vector<64x1xf32>
        %22 = arith.addf %19, %21 : vector<64x1xf32>
        %23 = arith.negf %22 : vector<64x1xf32>
        %24 = math.exp %23 : vector<64x1xf32>
        %cst_16 = arith.constant 1.000000e+00 : f32
        %25 = vector.broadcast %cst_16 : f32 to vector<64x1xf32>
        %26 = arith.addf %25, %24 : vector<64x1xf32>
        %27 = arith.divf %25, %26 : vector<64x1xf32>
        %28 = vector.shape_cast %27 : vector<64x1xf32> to vector<64x1xf32>
        %29 = vector.broadcast %28 : vector<64x1xf32> to vector<64x128xf32>
        %c0_17 = arith.constant 0 : index
        %c0_18 = arith.constant 0 : index
        %30 = vector.load %arg10[%c0_17, %c0_18] : memref<64x128xf32, #tpu.memory_space<vmem>>, vector<64x128xf32>
        tpu.vector_store %arg10[%c0_17, %c0_18], %29 {strides = array<i32>} : memref<64x128xf32, #tpu.memory_space<vmem>>, vector<64x128xf32>,
        %c0_19 = arith.constant 0 : index
        %c0_20 = arith.constant 0 : index
        %31 = vector.load %arg9[%c0_19, %c0_20] : memref<64x128xf32, #tpu.memory_space<vmem>>, vector<64x128xf32>
        %cst_21 = arith.constant dense<0.000000e+00> : vector<64xf32>
        %32 = vector.multi_reduction <add>, %31, %cst_21 [1] : vector<64x128xf32> to vector<64xf32>
        %33 = vector.shape_cast %32 : vector<64xf32> to vector<64x1xf32>
        %cst_22 = arith.constant 0.000000e+00 : f32
        %34 = vector.broadcast %cst_22 : f32 to vector<64x1xf32>
        %35 = arith.cmpf ogt, %33, %34 : vector<64x1xf32>
        %cst_23 = arith.constant 1.000000e+00 : f32
        %36 = vector.broadcast %cst_23 : f32 to vector<64x1xf32>
        %37 = arith.divf %36, %33 : vector<64x1xf32>
        %cst_24 = arith.constant 0.000000e+00 : f32
        %38 = vector.broadcast %cst_24 : f32 to vector<64x1xf32>
        %39 = arith.select %35, %37, %38 : vector<64x1xi1>, vector<64x1xf32>
        %40 = vector.shape_cast %39 : vector<64x1xf32> to vector<64x1xf32>
        %41 = vector.broadcast %40 : vector<64x1xf32> to vector<64x128xf32>
        %c0_25 = arith.constant 0 : index
        %c0_26 = arith.constant 0 : index
        %42 = vector.load %arg9[%c0_25, %c0_26] : memref<64x128xf32, #tpu.memory_space<vmem>>, vector<64x128xf32>
        tpu.vector_store %arg9[%c0_25, %c0_26], %41 {strides = array<i32>} : memref<64x128xf32, #tpu.memory_space<vmem>>, vector<64x128xf32>,
      } else {
      }
    } else {
    }
    %c1_i32 = arith.constant 1 : i32
    %3 = arith.cmpi eq, %arg0, %c1_i32 : i32
    %4 = arith.extui %3 : i1 to i32
    %c0_i32_1 = arith.constant 0 : i32
    %5 = arith.cmpi ne, %4, %c0_i32_1 : i32
    scf.if %5 {
      %c0 = arith.constant 0 : index
      %c0_2 = arith.constant 0 : index
      %6 = vector.load %arg5[%c0, %c0_2] : memref<8x128xi32, #tpu.memory_space<vmem>>, vector<8x128xi32>
      %c0_3 = arith.constant 0 : index
      %c0_4 = arith.constant 0 : index
      %7 = vector.load %arg6[%c0_3, %c0_4] : memref<8x128xi32, #tpu.memory_space<vmem>>, vector<8x128xi32>
      %cst = arith.constant 0.000000e+00 : f32
      %8 = vector.broadcast %cst : f32 to vector<8x128xf32>
      %c0_5 = arith.constant 0 : index
      %c0_6 = arith.constant 0 : index
      %9 = vector.load %arg11[%c0_5, %c0_6] : memref<8x128xf32, #tpu.memory_space<vmem>>, vector<8x128xf32>
      tpu.vector_store %arg11[%c0_5, %c0_6], %8 {strides = array<i32>} : memref<8x128xf32, #tpu.memory_space<vmem>>, vector<8x128xf32>,
      %cst_7 = arith.constant 0.000000e+00 : f32
      %10 = vector.broadcast %cst_7 : f32 to vector<8x128xf32>
      %c0_8 = arith.constant 0 : index
      %c0_9 = arith.constant 0 : index
      %11 = vector.load %arg8[%c0_8, %c0_9] : memref<8x128xf32, #tpu.memory_space<vmem>>, vector<8x128xf32>
      tpu.vector_store %arg8[%c0_8, %c0_9], %10 {strides = array<i32>} : memref<8x128xf32, #tpu.memory_space<vmem>>, vector<8x128xf32>,
      %c0_i32_10 = arith.constant 0 : i32
      %c64_i32 = arith.constant 64 : i32
      %12 = arith.addi %c0_i32_10, %c64_i32 : i32
      %c1_i32_11 = arith.constant 1 : i32
      scf.for %arg12 = %c0_i32_10 to %12 step %c1_i32_11  : i32 {
        %19 = arith.index_cast %arg12 : i32 to index
        %c0_21 = arith.constant 0 : index
        %20 = vector.load %arg10[%19, %c0_21] : memref<64x128xf32, #tpu.memory_space<vmem>>, vector<1x128xf32>
        %21 = arith.index_cast %arg12 : i32 to index
        %c0_22 = arith.constant 0 : index
        %22 = vector.load %arg9[%21, %c0_22] : memref<64x128xf32, #tpu.memory_space<vmem>>, vector<1x128xf32>
        %23 = vector.broadcast %arg12 : i32 to vector<8x128xi32>
        %24 = arith.cmpi eq, %7, %23 : vector<8x128xi32>
        %c0_23 = arith.constant 0 : index
        %c0_24 = arith.constant 0 : index
        %25 = vector.load %arg11[%c0_23, %c0_24] : memref<8x128xf32, #tpu.memory_space<vmem>>, vector<8x128xf32>
        %26 = vector.shape_cast %20 : vector<1x128xf32> to vector<1x128xf32>
        %27 = vector.broadcast %26 : vector<1x128xf32> to vector<8x128xf32>
        %28 = arith.select %24, %27, %25 : vector<8x128xi1>, vector<8x128xf32>
        %c0_25 = arith.constant 0 : index
        %c0_26 = arith.constant 0 : index
        %29 = vector.load %arg11[%c0_25, %c0_26] : memref<8x128xf32, #tpu.memory_space<vmem>>, vector<8x128xf32>
        tpu.vector_store %arg11[%c0_25, %c0_26], %28 {strides = array<i32>} : memref<8x128xf32, #tpu.memory_space<vmem>>, vector<8x128xf32>,
        %30 = vector.broadcast %arg12 : i32 to vector<8x128xi32>
        %31 = arith.cmpi eq, %6, %30 : vector<8x128xi32>
        %c0_27 = arith.constant 0 : index
        %c0_28 = arith.constant 0 : index
        %32 = vector.load %arg8[%c0_27, %c0_28] : memref<8x128xf32, #tpu.memory_space<vmem>>, vector<8x128xf32>
        %33 = vector.shape_cast %22 : vector<1x128xf32> to vector<1x128xf32>
        %34 = vector.broadcast %33 : vector<1x128xf32> to vector<8x128xf32>
        %35 = arith.select %31, %34, %32 : vector<8x128xi1>, vector<8x128xf32>
        %c0_29 = arith.constant 0 : index
        %c0_30 = arith.constant 0 : index
        %36 = vector.load %arg8[%c0_29, %c0_30] : memref<8x128xf32, #tpu.memory_space<vmem>>, vector<8x128xf32>
        tpu.vector_store %arg8[%c0_29, %c0_30], %35 {strides = array<i32>} : memref<8x128xf32, #tpu.memory_space<vmem>>, vector<8x128xf32>,
      }
      %c64_i32_12 = arith.constant 64 : i32
      %c0_13 = arith.constant 0 : index
      %c0_14 = arith.constant 0 : index
      %13 = vector.load %arg7[%c0_13, %c0_14] : memref<8x128xf32, #tpu.memory_space<vmem>>, vector<8x128xf32>
      %c0_15 = arith.constant 0 : index
      %c0_16 = arith.constant 0 : index
      %14 = vector.load %arg11[%c0_15, %c0_16] : memref<8x128xf32, #tpu.memory_space<vmem>>, vector<8x128xf32>
      %15 = arith.mulf %13, %14 : vector<8x128xf32>
      %c0_17 = arith.constant 0 : index
      %c0_18 = arith.constant 0 : index
      %16 = vector.load %arg8[%c0_17, %c0_18] : memref<8x128xf32, #tpu.memory_space<vmem>>, vector<8x128xf32>
      %17 = arith.mulf %15, %16 : vector<8x128xf32>
      %c0_19 = arith.constant 0 : index
      %c0_20 = arith.constant 0 : index
      %18 = vector.load %arg8[%c0_19, %c0_20] : memref<8x128xf32, #tpu.memory_space<vmem>>, vector<8x128xf32>
      tpu.vector_store %arg8[%c0_19, %c0_20], %17 {strides = array<i32>} : memref<8x128xf32, #tpu.memory_space<vmem>>, vector<8x128xf32>,
    } else {
    }
    return
  }
  func.func @transform_0(%arg0: i32, %arg1: i32) -> (i32, i32) {
    %c0_i32 = arith.constant 0 : i32
    %c0_i32_0 = arith.constant 0 : i32
    %c0_i32_1 = arith.constant 0 : i32
    return %c0_i32, %c0_i32_0 : i32, i32
  }
  func.func @transform_1(%arg0: i32, %arg1: i32) -> (i32, i32) {
    %c0_i32 = arith.constant 0 : i32
    %c0_i32_0 = arith.constant 0 : i32
    %c0_i32_1 = arith.constant 0 : i32
    return %c0_i32, %c0_i32_0 : i32, i32
  }
  func.func @transform_2(%arg0: i32, %arg1: i32) -> (i32, i32) {
    %c0_i32 = arith.constant 0 : i32
    %c0_i32_0 = arith.constant 0 : i32
    %c0_i32_1 = arith.constant 0 : i32
    return %c0_i32, %c0_i32_0 : i32, i32
  }
  func.func @transform_3(%arg0: i32, %arg1: i32) -> (i32, i32) {
    %c0_i32 = arith.constant 0 : i32
    %c0_i32_0 = arith.constant 0 : i32
    return %arg1, %c0_i32 : i32, i32
  }
  func.func @transform_4(%arg0: i32, %arg1: i32) -> (i32, i32) {
    %0 = arith.muli %arg1, %arg0 : i32
    %c0_i32 = arith.constant 0 : i32
    %c0_i32_0 = arith.constant 0 : i32
    return %0, %c0_i32 : i32, i32
  }
  func.func @transform_5(%arg0: i32, %arg1: i32) -> (i32, i32) {
    %0 = arith.muli %arg1, %arg0 : i32
    %c0_i32 = arith.constant 0 : i32
    %c0_i32_0 = arith.constant 0 : i32
    return %0, %c0_i32 : i32, i32
  }
  func.func @transform_6(%arg0: i32, %arg1: i32) -> (i32, i32) {
    %0 = arith.muli %arg1, %arg0 : i32
    %c0_i32 = arith.constant 0 : i32
    %c0_i32_0 = arith.constant 0 : i32
    return %0, %c0_i32 : i32, i32
  }
}

</mosaic_0001>

<bundles_post_ra>
// kernel: tpu_custom_call.1
= control target key start
LH: loop header
LB: loop body
LE: loop exit
PB: predicated region body
PF: predicated region fallthrough
CT: control target
= control target key end

     0   :  { %s1268_s0 = inlined_call_operand.hbm [shape: f32[64,128], index: 0, kind: input, shape index: {}]   ;;  %s1269_s1 = inlined_call_operand.vmem [shape: f32[1,128], index: 1, kind: input, shape index: {}]   ;;  %s1270_s2 = inlined_call_operand.<no memory space> [shape: f32[1,1], index: 2, kind: input, shape index: {}]   ;;  %s1271_s3 = inlined_call_operand.vmem [shape: s32[8,128], index: 3, kind: input, shape index: {}]   ;;  %s1272_s4 = inlined_call_operand.hbm [shape: s32[8,128], index: 4, kind: input, shape index: {}]   ;;  %s1273_s5 = inlined_call_operand.vmem [shape: f32[8,128], index: 5, kind: input, shape index: {}]   ;;  %s1274_s6 = inlined_call_operand.hbm [shape: f32[8,128], index: 6, kind: output, shape index: {}]  }
   0x1   :  { %v11_v0 = vstv %s1270_s2 }
   0x2   :  { %12 = vst [vmem:[#allocation5] sm:$0x1] %v11_v0 }
   0x3   :  { %13 = vsyncpa [#allocation7], 0 }
   0x4   :  { %14 = vsyncpa [#allocation10], 0 }
   0x5   :  { %16 = vsyncpa [#allocation10 + $0x1], 0 }
   0x6   :  { %17 = vsyncpa [#allocation8], 0 }
   0x7   :  { %19 = vsyncpa [#allocation8 + $0x1], 0  ;;  %s1124_s23 = smov 0   ;;  %s1126_s24 = smov 0  }
   0x8   :  { %s1128_s25 = smov 0  }
   0x9 LB: > { %s783_s2 = sadd.s32 4294967295, %s1067_s25   ;;  %s784_s26 = sadd.s32 4294967294, %s1067_s25   ;;  %s1067_s25 = sphi %s1128_s25, %s25_s25   ;;  %s1063_s24 = sphi %s1126_s24, %s1289_s24   ;;  %s1059_s23 = sphi %s1124_s23, %s1288_s23  }
   0xa   : > { %s37_s27 = sadd.s32 1, %s1063_s24  ;;  %p785_p0 = scmp.ge.s32.totalorder %s1067_s25, 1 }
   0xb   : > { %p39_p1 = scmp.ge.s32.totalorder %s37_s27, 2  ;;  %p215_p2 = scmp.lt.s32.totalorder %s1067_s25, 3 }
   0xc   : > { %p1146_p3 = scmp.eq.s32.totalorder %s783_s2, 0  ;;  %s1077_s30 = smov [#allocation6]  }
   0xd   : > { %s1291_s27 = smov (%p39_p1, %s37_s27), 0  ;;  %p1152_p4 = pnand %p785_p0, %p215_p2 }
   0xe   : > { %s1278_s28 = scalar_select %p1146_p3, 1, 0 }
   0xf   : > { %s1279_s29 = scalar_select %p1152_p4, 1, 0 }
  0x10   : > { %s227_s7 = sshll.u32 %s1077_s30, 4  ;;  %p824_p5 = pneg %p1152_p4  ;;  %s228_s7 = int_to_ptr.vmem [resolvable:$true] %s227_s7 }
  0x11   : > { %s943_s11 = scalar_lea.hbm %s1268_s0, 1024 }
  0x12   : > { %p1161_p7 = pnand %p1146_p3, %p824_p5  ;;  %p944_p10 = scmp.ne.s32.totalorder %s1268_s0, %s943_s11 }
  0x13   : > { %p950_p0 = scmp.lt.u32.totalorder %s943_s11, %s1268_s0 }
  0x14   : > { %p945_p11 = pneg %p1161_p7 }
  0x16   : > { %p946_p12 = pnand %p945_p11, %p944_p10 }
  0x18   : > { %p947_p13 = pneg %p946_p12 }
  0x1a   : > { %p952_p1 = pnand %p950_p0, %p947_p13 }
  0x1c   : > { %955 = shalt.err (!%p952_p1)
}
  0x1d   : > { %s956_s16 = scalar_lea.vmem %s228_s7, 1024  ;;  %p964_p9 = scmp.lt.s32.totalorder %s228_s7, %s228_s7 }
  0x1e   : > { %p957_p2 = scmp.ne.s32.totalorder %s228_s7, %s956_s16  ;;  %p965_p8 = scmp.lt.s32.totalorder %s956_s16, %s956_s16 }
  0x20   : > { %p959_p5 = pnand %p957_p2, %p945_p11  ;;  %p966_p3 = por %p965_p8, %p964_p9 }
  0x22   : > { %p960_p6 = pneg %p959_p5 }
  0x24   : > { %p967_p4 = pnand %p966_p3, %p960_p6 }
  0x26   : > { %970 = shalt.err (!%p967_p4)
}
  0x27   : > { %s1078_s17 = smov 128   ;;  %s1079_s18 = smov 8  }
  0x28   : > { %827 = dma.hbm_to_vmem [thread:$0]  (!%p1161_p7), %s1268_s0, 1024, %s228_s7, [#allocation7], %s1078_s17, %s1078_s17, %s1079_s18  }
  0x29   : > { %s1080_s21 = smov [#allocation9]   ;;  %p1281_p10 = scmp.lt.s32.totalorder %s1067_s25, 2 }
  0x2a   : > { %s266_s22 = sshll.u32 %s1080_s21, 4  ;;  %p1282_p11 = scmp.eq.s32.totalorder %s1067_s25, 0  ;;  %s267_s22 = int_to_ptr.vmem [resolvable:$true] %s266_s22 }
  0x2b   : > { %s971_s11 = scalar_lea.hbm %s1272_s4, 128 }
  0x2c   : > { %p1187_p12 = pnand %p1282_p11, %p1281_p10  ;;  %p972_p3 = scmp.ne.s32.totalorder %s1272_s4, %s971_s11 }
  0x2d   : > { %p978_p8 = scmp.lt.u32.totalorder %s971_s11, %s1272_s4 }
  0x2e   : > { %p973_p4 = pneg %p1187_p12 }
  0x30   : > { %p974_p6 = pnand %p973_p4, %p972_p3 }
  0x32   : > { %p975_p7 = pneg %p974_p6 }
  0x34   : > { %p980_p9 = pnand %p978_p8, %p975_p7 }
  0x36   : > { %983 = shalt.err (!%p980_p9)
}
  0x37   : > { %s984_s14 = scalar_lea.vmem %s267_s22, 128  ;;  %s991_s15 = scalar_lea.vmem %s267_s22, 256 }
  0x38   : > { %p985_p13 = scmp.ne.s32.totalorder %s267_s22, %s984_s14  ;;  %p992_p2 = scmp.lt.s32.totalorder %s267_s22, %s267_s22 }
  0x39   : > { %p993_p5 = scmp.lt.s32.totalorder %s991_s15, %s984_s14 }
  0x3a   : > { %p987_p0 = pnand %p985_p13, %p973_p4 }
  0x3b   : > { %p994_p10 = por %p993_p5, %p992_p2 }
  0x3c   : > { %p988_p1 = pneg %p987_p0 }
  0x3e   : > { %p995_p11 = pnand %p994_p10, %p988_p1 }
  0x40   : > { %998 = shalt.err (!%p995_p11)
}
  0x41   : > { %831 = dma.hbm_to_vmem [thread:$0]  (!%p1187_p12), %s1272_s4, 128, %s267_s22, [#allocation10]  }
  0x42   : > { %p1284_p3 = scmp.ne.s32.totalorder %s1279_s29, 0 }
  0x43   : > { %p1285_p6 = scmp.ne.s32.totalorder (!%p1284_p3), %s1278_s28, 0 }
  0x44   : > { %284 = sbr.rel (%p1284_p3) target bundleno = 469 (0x1d5), region = 44 }
  0x4b   : > { %1046 = dma.done.wait (%p1285_p6), [#allocation7], 1024  }
  0x4c   : > { %1048 = vsyncadd (%p1285_p6), [#allocation7], 4294966272 }
  0x4d   : > { %1050 = dma.done.wait (%p1285_p6), [#allocation10], 128  }
  0x4e   : > { %1052 = vsyncadd (%p1285_p6), [#allocation10], 4294967168  ;;  %p794_p4 = scmp.ne.s32.totalorder %s1059_s23, 0 }
  0x4f   : > { %v360_v1 = vld [vmem:[%s1271_s3] sm:$0xff] (!%p794_p4)  ;;  %v1081_v2 = vmov (!%p794_p4), 0.0   ;;  %s1069_s29 = smov (!%p794_p4), 0  }
  0x50   : > { %347 = sbr.rel (%p794_p4) target bundleno = 420 (0x1a4), region = 56  ;;  %352 = vst [vmem:[#allocation2] sm:$0xff] (!%p794_p4), %v1081_v2  ;;  %353 = vst [vmem:[#allocation2 + $0x8] sm:$0xff] (!%p794_p4), %v1081_v2 }
  0x51   : > { %354 = vst [vmem:[#allocation2 + $0x10] sm:$0xff] (!%p794_p4), %v1081_v2  ;;  %355 = vst [vmem:[#allocation2 + $0x18] sm:$0xff] (!%p794_p4), %v1081_v2 }
  0x52   : > { %356 = vst [vmem:[#allocation2 + $0x20] sm:$0xff] (!%p794_p4), %v1081_v2  ;;  %357 = vst [vmem:[#allocation2 + $0x28] sm:$0xff] (!%p794_p4), %v1081_v2 }
  0x53   : > { %358 = vst [vmem:[#allocation2 + $0x30] sm:$0xff] (!%p794_p4), %v1081_v2  ;;  %359 = vst [vmem:[#allocation2 + $0x38] sm:$0xff] (!%p794_p4), %v1081_v2 }
  0x57 LB: >> { %v367_v3 = vstv %s1071_s29  ;;  %v1082_v4 = vmov 0.0   ;;  %s376_s28 = scalar_lea.vmem [#allocation2], %s1071_s29  ;;  %s366_s29 = sadd.s32 1, %s1071_s29   ;;  %s1071_s29 = sphi %s1069_s29, %s366_s29  }
  0x58   : >> { %vm368_vm0 = vcmp.eq.s32.totalorder %v360_v1, %v367_v3  ;;  %p363_p12 = scmp.ge.s32.totalorder %s366_s29, 64  }
  0x59   : >> { %v369_v5 = vsel %vm368_vm0, 1.0, %v1082_v4  ;;  %v383_v14 = vld [vmem:[#allocation6] sm:$0xff] (%p363_p12)  ;;  %v795_v15 = vld [vmem:[%s1269_s1] ss:$0 sm:$0xff] (%p363_p12)  ;;  %v384_v16 = vld [vmem:[#allocation6 + $0x8] sm:$0xff] (%p363_p12)  ;;  %v1083_v39 = vmov (%p363_p12), 0  }
  0x5a   : >> { %v370_v6 = vrot.slane %v369_v5, 4  ;;  %v377_v11 = vld [vmem:[%s376_s28] sm:$0x1]  ;;  %v398_v17 = vmul.f32 (%p363_p12), %v795_v15, %v383_v14  ;;  %v386_v19 = vld [vmem:[#allocation6 + $0x18] sm:$0xff] (%p363_p12)  ;;  %v399_v21 = vmul.f32 (%p363_p12), %v795_v15, %v384_v16  ;;  %v387_v23 = vld [vmem:[#allocation6 + $0x20] sm:$0xff] (%p363_p12)  ;;  %893 = vset.pattern.permute.xlu0 (%p363_p12), %v1083_v39  ;;  %894 = vset.pattern.permute.xlu1 (%p363_p12), %v1083_v39 }
  0x5b   : > { %v385_v18 = vld [vmem:[#allocation6 + $0x10] sm:$0xff] (%p363_p12)  ;;  %v401_v22 = vmul.f32 (%p363_p12), %v795_v15, %v386_v19  ;;  %v388_v24 = vld [vmem:[#allocation6 + $0x28] sm:$0xff] (%p363_p12)  ;;  %v402_v25 = vmul.f32 (%p363_p12), %v795_v15, %v387_v23  ;;  %v390_v28 = vld [vmem:[#allocation6 + $0x38] sm:$0xff] (%p363_p12) }
  0x5c   : >> { %v371_v7 = vadd.f32 %v370_v6, %v369_v5  ;;  %v400_v20 = vmul.f32 (%p363_p12), %v795_v15, %v385_v18  ;;  %406 = vadd.xlane.f32.xlu0 (%p363_p12), %v398_v17  ;;  %v403_v26 = vmul.f32 (%p363_p12), %v795_v15, %v388_v24  ;;  %v389_v27 = vld [vmem:[#allocation6 + $0x30] sm:$0xff] (%p363_p12)  ;;  %v405_v30 = vmul.f32 (%p363_p12), %v795_v15, %v390_v28  ;;  %v796_v40 = vld [vmem:[#allocation5] ss:$0 sm:$0xff] (%p363_p12) }
  0x5d   : > { %v404_v29 = vmul.f32 (%p363_p12), %v795_v15, %v389_v27 }
  0x5e   : >> { %v372_v8 = vrot.slane %v371_v7, 2  ;;  %410 = vadd.xlane.f32.xlu1 (%p363_p12), %v400_v20 }
  0x60   : >> { %v373_v9 = vadd.f32 %v372_v8, %v371_v7  ;;  %408 = vadd.xlane.f32.xlu0 (%p363_p12), %v399_v21 }
  0x62   : >> { %v374_v10 = vrot.slane %v373_v9, 1  ;;  %365 = sbr.rel (!%p363_p12) target bundleno = 87 (0x57), region = 133  ;;  %412 = vadd.xlane.f32.xlu1 (%p363_p12), %v401_v22 }
  0x64   : >> { %v375_v12 = vadd.f32 %v374_v10, %v373_v9  ;;  %414 = vadd.xlane.f32.xlu0 (%p363_p12), %v402_v25 }
  0x66   : >> { %v378_v13 = vadd.f32 %v377_v11, %v375_v12  ;;  %416 = vadd.xlane.f32.xlu1 (%p363_p12), %v403_v26 }
  0x68   : >> { %379 = vst [vmem:[%s376_s28] sm:$0x1] %v378_v13  ;;  %418 = vadd.xlane.f32.xlu0 (%p363_p12), %v404_v29 }
  0x6a   : > { %420 = vadd.xlane.f32.xlu1 %v405_v30 }
  0x6f   : > { %v533_v31 = vld [vmem:[#allocation2] sm:$0xff]  ;;  %v534_v32 = vld [vmem:[#allocation2 + $0x8] sm:$0xff]  ;;  %v535_v33 = vld [vmem:[#allocation2 + $0x10] sm:$0xff] }
  0x70   : > { %541 = vadd.xlane.f32.xlu0 %v533_v31  ;;  %543 = vadd.xlane.f32.xlu1 %v534_v32  ;;  %v536_v34 = vld [vmem:[#allocation2 + $0x18] sm:$0xff]  ;;  %v537_v35 = vld [vmem:[#allocation2 + $0x20] sm:$0xff]  ;;  %v538_v36 = vld [vmem:[#allocation2 + $0x28] sm:$0xff] }
  0x71   : > { %v539_v37 = vld [vmem:[#allocation2 + $0x30] sm:$0xff]  ;;  %v540_v38 = vld [vmem:[#allocation2 + $0x38] sm:$0xff] }
  0x74   : > { %545 = vadd.xlane.f32.xlu0 %v535_v33  ;;  %547 = vadd.xlane.f32.xlu1 %v536_v34 }
  0x78   : > { %549 = vadd.xlane.f32.xlu0 %v537_v35  ;;  %551 = vadd.xlane.f32.xlu1 %v538_v36 }
  0x7c   : > { %553 = vadd.xlane.f32.xlu0 %v539_v37  ;;  %555 = vadd.xlane.f32.xlu1 %v540_v38 }
  0xe9   : > { %v407_v41 = vpop.xlane.xlu0 %406 }
  0xea   : > { %v429_v42 = vadd.f32 %v796_v40, %v407_v41 }
  0xeb   : > { %v411_v43 = vpop.xlane.xlu1 %410 }
  0xec   : > { %v431_v44 = vadd.f32 %v796_v40, %v411_v43  ;;  %v797_v45 = vmul.f32 -1.442695, %v429_v42 }
  0xed   : > { %v409_v46 = vpop.xlane.xlu0 %408 }
  0xee   : > { %v799_v47 = vmul.f32 -1.442695, %v431_v44  ;;  %895 = vpow2.f32 %v797_v45  ;;  %v430_v48 = vadd.f32 %v796_v40, %v409_v46 }
  0xef   : > { %v413_v49 = vpop.xlane.xlu1 %412 }
  0xf0   : > { %897 = vpow2.f32 %v799_v47  ;;  %v432_v50 = vadd.f32 %v796_v40, %v413_v49  ;;  %v798_v51 = vmul.f32 -1.442695, %v430_v48 }
  0xf1   : > { %v415_v53 = vpop.xlane.xlu0 %414 }
  0xf2   : > { %v800_v52 = vmul.f32 -1.442695, %v432_v50  ;;  %899 = vpow2.f32 %v798_v51  ;;  %v433_v54 = vadd.f32 %v796_v40, %v415_v53 }
  0xf3   : > { %v417_v55 = vpop.xlane.xlu1 %416 }
  0xf4   : > { %901 = vpow2.f32 %v800_v52  ;;  %v801_v56 = vmul.f32 -1.442695, %v433_v54  ;;  %v434_v57 = vadd.f32 %v796_v40, %v417_v55 }
  0xf5   : > { %v419_v58 = vpop.xlane.xlu0 %418 }
  0xf6   : > { %903 = vpow2.f32 %v801_v56  ;;  %v435_v59 = vadd.f32 %v796_v40, %v419_v58  ;;  %v802_v62 = vmul.f32 -1.442695, %v434_v57 }
  0xf7   : > { %v421_v60 = vpop.xlane.xlu1 %420 }
  0xf8   : > { %v896_v61 = vpop.eup %895  ;;  %v803_v1 = vmul.f32 -1.442695, %v435_v59  ;;  %v436_v4 = vadd.f32 %v796_v40, %v421_v60 }
  0xf9   : > { %v461_v0 = vadd.f32 1.0, %v896_v61 }
  0xfa   : > { %v898_v63 = vpop.eup %897  ;;  %v804_v11 = vmul.f32 -1.442695, %v436_v4 }
  0xfb   : > { %905 = vrcp.f32 %v461_v0  ;;  %v463_v6 = vadd.f32 1.0, %v898_v63 }
  0xfc   : > { %v900_v5 = vpop.eup %899  ;;  %907 = vpow2.f32 %v802_v62 }
  0xfd   : > { %v542_v2 = vpop.xlane.xlu0 %541  ;;  %v544_v3 = vpop.xlane.xlu1 %543  ;;  %v462_v8 = vadd.f32 1.0, %v900_v5  ;;  %909 = vpow2.f32 %v803_v1 }
  0xfe   : > { %v902_v7 = vpop.eup %901  ;;  %911 = vrcp.f32 %v544_v3  ;;  %vm558_vm1 = vcmp.gt.f32.partialorder %v544_v3, 0.0  ;;  %vm557_vm3 = vcmp.gt.f32.partialorder %v542_v2, 0.0 }
  0xff   : > { %913 = vrcp.f32 %v462_v8  ;;  %v464_v13 = vadd.f32 1.0, %v902_v7 }
 0x100   : > { %v904_v12 = vpop.eup %903  ;;  %915 = vrcp.f32 %v463_v6 }
 0x101   : > { %v548_v9 = vpop.xlane.xlu1 %547  ;;  %v546_v10 = vpop.xlane.xlu0 %545  ;;  %v465_v15 = vadd.f32 1.0, %v904_v12 }
 0x102   : > { %917 = vrcp.f32 %v548_v9  ;;  %vm560_vm2 = vcmp.gt.f32.partialorder %v548_v9, 0.0  ;;  %vm559_vm5 = vcmp.gt.f32.partialorder %v546_v10, 0.0 }
 0x103   : > { %919 = vrcp.f32 %v542_v2 }
 0x104   : > { %921 = vpow2.f32 %v804_v11 }
 0x105   : > { %v552_v14 = vpop.xlane.xlu1 %551  ;;  %923 = vrcp.f32 %v464_v13  ;;  %v550_v16 = vpop.xlane.xlu0 %549 }
 0x106   : > { %v906_v17 = vpop.eup %905  ;;  %925 = vrcp.f32 %v552_v14  ;;  %vm562_vm4 = vcmp.gt.f32.partialorder %v552_v14, 0.0  ;;  %vm561_vm7 = vcmp.gt.f32.partialorder %v550_v16, 0.0 }
 0x107   : > { %v908_v18 = vpop.eup %907  ;;  %487 = vperm.xlu0 %893, %v906_v17   ;;  %927 = vrcp.f32 %v546_v10 }
 0x108   : > { %v910_v20 = vpop.eup %909  ;;  %929 = vrcp.f32 %v465_v15  ;;  %v466_v23 = vadd.f32 1.0, %v908_v18 }
 0x109   : > { %v556_v19 = vpop.xlane.xlu1 %555  ;;  %v912_v21 = vpop.eup %911  ;;  %v467_v31 = vadd.f32 1.0, %v910_v20 }
 0x10a   : > { %931 = vrcp.f32 %v556_v19  ;;  %v914_v22 = vpop.eup %913  ;;  %v582_v24 = vsel %vm558_vm1, %v912_v21, 0.0  ;;  %v554_v26 = vpop.xlane.xlu0 %553  ;;  %vm564_vm6 = vcmp.gt.f32.partialorder %v556_v19, 0.0 }
 0x10b   : > { %933 = vrcp.f32 %v550_v16  ;;  %v916_v25 = vpop.eup %915  ;;  %492 = vperm.xlu1 %894, %v914_v22   ;;  %590 = vst [vmem:[#allocation2 + $0x8] sm:$0xff] %v582_v24  ;;  %vm563_vm8 = vcmp.gt.f32.partialorder %v554_v26, 0.0 }
 0x10c   : > { %v918_v27 = vpop.eup %917  ;;  %935 = vrcp.f32 %v554_v26 }
 0x10d   : > { %v920_v28 = vpop.eup %919  ;;  %v584_v29 = vsel %vm560_vm2, %v918_v27, 0.0  ;;  %937 = vrcp.f32 %v466_v23 }
 0x10e   : > { %v922_v30 = vpop.eup %921  ;;  %592 = vst [vmem:[#allocation2 + $0x18] sm:$0xff] %v584_v29  ;;  %v581_v32 = vsel %vm557_vm3, %v920_v28, 0.0  ;;  %939 = vrcp.f32 %v467_v31 }
 0x10f   : > { %v924_v33 = vpop.eup %923  ;;  %497 = vperm.xlu1 %894, %v916_v25   ;;  %589 = vst [vmem:[#allocation2] sm:$0xff] %v581_v32  ;;  %v468_v38 = vadd.f32 1.0, %v922_v30 }
 0x110   : > { %v926_v34 = vpop.eup %925 }
 0x111   : > { %v928_v35 = vpop.eup %927  ;;  %v586_v36 = vsel %vm562_vm4, %v926_v34, 0.0  ;;  %941 = vrcp.f32 %v468_v38 }
 0x112   : > { %v930_v37 = vpop.eup %929  ;;  %594 = vst [vmem:[#allocation2 + $0x28] sm:$0xff] %v586_v36  ;;  %v583_v39 = vsel %vm559_vm5, %v928_v35, 0.0 }
 0x113   : > { %502 = vperm.xlu1 %894, %v924_v33   ;;  %591 = vst [vmem:[#allocation2 + $0x10] sm:$0xff] %v583_v39 }
 0x114   : > { %v932_v40 = vpop.eup %931 }
 0x115   : > { %v934_v41 = vpop.eup %933  ;;  %v588_v42 = vsel %vm564_vm6, %v932_v40, 0.0 }
 0x116   : > { %596 = vst [vmem:[#allocation2 + $0x38] sm:$0xff] %v588_v42  ;;  %v585_v43 = vsel %vm561_vm7, %v934_v41, 0.0  ;;  %v936_v44 = vpop.eup %935 }
 0x117   : > { %593 = vst [vmem:[#allocation2 + $0x20] sm:$0xff] %v585_v43  ;;  %507 = vperm.xlu1 %894, %v930_v37   ;;  %v587_v45 = vsel %vm563_vm8, %v936_v44, 0.0  ;;  %v938_v46 = vpop.eup %937 }
 0x118   : > { %595 = vst [vmem:[#allocation2 + $0x30] sm:$0xff] %v587_v45  ;;  %v940_v47 = vpop.eup %939 }
 0x11b   : > { %512 = vperm.xlu1 %894, %v938_v46   ;;  %v942_v48 = vpop.eup %941 }
 0x11f   : > { %517 = vperm.xlu1 %894, %v940_v47  }
 0x123   : > { %522 = vperm.xlu1 %894, %v942_v48  }
 0x186   : > { %v488_v49 = vpop.permute.xlu0 %487 }
 0x187   : > { %525 = vst [vmem:[#allocation3] sm:$0xff] %v488_v49 }
 0x18a   : > { %v493_v50 = vpop.permute.xlu1 %492 }
 0x18b   : > { %526 = vst [vmem:[#allocation3 + $0x8] sm:$0xff] %v493_v50 }
 0x18e   : > { %v498_v51 = vpop.permute.xlu1 %497 }
 0x18f   : > { %527 = vst [vmem:[#allocation3 + $0x10] sm:$0xff] %v498_v51 }
 0x192   : > { %v503_v52 = vpop.permute.xlu1 %502 }
 0x193   : > { %528 = vst [vmem:[#allocation3 + $0x18] sm:$0xff] %v503_v52 }
 0x196   : > { %v508_v53 = vpop.permute.xlu1 %507 }
 0x197   : > { %529 = vst [vmem:[#allocation3 + $0x20] sm:$0xff] %v508_v53 }
 0x19a   : > { %v513_v54 = vpop.permute.xlu1 %512 }
 0x19b   : > { %530 = vst [vmem:[#allocation3 + $0x28] sm:$0xff] %v513_v54 }
 0x19e   : > { %v518_v55 = vpop.permute.xlu1 %517 }
 0x19f   : > { %531 = vst [vmem:[#allocation3 + $0x30] sm:$0xff] %v518_v55 }
 0x1a2   : > { %v523_v56 = vpop.permute.xlu1 %522 }
 0x1a3   : > { %532 = vst [vmem:[#allocation3 + $0x38] sm:$0xff] %v523_v56 }
 0x1a4 PF: > { %p805_p7 = scmp.ne.s32.totalorder %s1059_s23, 1 }
 0x1a5   : > { %v601_v57 = vld [vmem:[%s1271_s3] sm:$0xff] (!%p805_p7)  ;;  %v602_v58 = vld [vmem:[#allocation9] sm:$0xff] (!%p805_p7)  ;;  %v1084_v59 = vmov (!%p805_p7), 0.0   ;;  %s1073_s9 = smov (!%p805_p7), 0  }
 0x1a6   : > { %600 = sbr.rel (%p805_p7) target bundleno = 446 (0x1be), region = 75  ;;  %603 = vst [vmem:[#allocation4] sm:$0xff] (!%p805_p7), %v1084_v59  ;;  %604 = vst [vmem:[#allocation11] sm:$0xff] (!%p805_p7), %v1084_v59 }
 0x1ad LB: >> { %v617_v60 = vld [vmem:[#allocation4] sm:$0xff]  ;;  %v615_v62 = vstv %s1075_s9  ;;  %s611_s10 = scalar_lea.vmem [#allocation3], %s1075_s9  ;;  %s613_s23 = scalar_lea.vmem [#allocation2], %s1075_s9  ;;  %s1075_s9 = sphi %s1073_s9, %s610_s9  }
 0x1ae   : >> { %v625_v61 = vld [vmem:[#allocation11] sm:$0xff]  ;;  %vm616_vm9 = vcmp.eq.s32.totalorder %v602_v58, %v615_v62  ;;  %vm624_vm10 = vcmp.eq.s32.totalorder %v601_v57, %v615_v62  ;;  %s610_s9 = sadd.s32 1, %s1075_s9  }
 0x1af   : >> { %v806_v63 = vld [vmem:[%s611_s10] ss:$0 sm:$0xff]  ;;  %p607_p8 = scmp.ge.s32.totalorder %s610_s9, 64  }
 0x1b0   : >> { %v807_v0 = vld [vmem:[%s613_s23] ss:$0 sm:$0xff]  ;;  %v622_v1 = vsel %vm616_vm9, %v806_v63, %v617_v60 }
 0x1b1   : >> { %v630_v2 = vsel %vm624_vm10, %v807_v0, %v625_v61  ;;  %623 = vst [vmem:[#allocation4] sm:$0xff] %v622_v1  ;;  %v632_v3 = vld [vmem:[%s1273_s5] sm:$0xff] (%p607_p8) }
 0x1b2   : >> { %631 = vst [vmem:[#allocation11] sm:$0xff] %v630_v2 }
 0x1b6   : > { %609 = sbr.rel (!%p607_p8) target bundleno = 429 (0x1ad), region = 144 }
 0x1b8   : > { %v633_v4 = vld [vmem:[#allocation4] sm:$0xff] (%p607_p8) }
 0x1b9   : > { %v635_v5 = vld [vmem:[#allocation11] sm:$0xff] (%p607_p8)  ;;  %v634_v6 = vmul.f32 (%p607_p8), %v633_v4, %v632_v3 }
 0x1bb   : > { %v636_v7 = vmul.f32 (%p607_p8), %v635_v5, %v634_v6 }
 0x1bd   : > { %637 = vst [vmem:[#allocation11] sm:$0xff] %v636_v7 }
 0x1be PF: > { %p1233_p9 = scmp.eq.s32.totalorder %s783_s2, 1  ;;  %s1085_s7 = smov [#allocation11]  }
 0x1bf   : > { %s653_s13 = sshll.u32 %s1085_s7, 4  ;;  %s654_s13 = int_to_ptr.vmem [resolvable:$true] %s653_s13 }
 0x1c0   : > { %s999_s14 = scalar_lea.vmem %s654_s13, 128  ;;  %s1005_s15 = scalar_lea.vmem %s654_s13, 256 }
 0x1c1   : > { %p1000_p13 = scmp.ne.s32.totalorder %s654_s13, %s999_s14  ;;  %p1006_p2 = scmp.lt.s32.totalorder %s654_s13, %s654_s13 }
 0x1c2   : > { %p1007_p5 = scmp.lt.s32.totalorder %s1005_s15, %s999_s14 }
 0x1c3   : > { %p1001_p0 = pnand %p1000_p13, %p1233_p9 }
 0x1c4   : > { %p1008_p10 = por %p1007_p5, %p1006_p2 }
 0x1c5   : > { %p1002_p1 = pneg %p1001_p0 }
 0x1c7   : > { %p1009_p11 = pnand %p1008_p10, %p1002_p1 }
 0x1c9   : > { %1012 = shalt.err (!%p1009_p11)
}
 0x1ca   : > { %s1013_s17 = scalar_lea.hbm %s1274_s6, 128 }
 0x1cb   : > { %p1014_p3 = scmp.ne.s32.totalorder %s1274_s6, %s1013_s17  ;;  %p1019_p12 = scmp.lt.u32.totalorder %s1013_s17, %s1274_s6 }
 0x1cd   : > { %p1015_p6 = pnand %p1014_p3, %p1233_p9 }
 0x1cf   : > { %p1016_p4 = pneg %p1015_p6 }
 0x1d1   : > { %p1021_p7 = pnand %p1019_p12, %p1016_p4 }
 0x1d3   : > { %1024 = shalt.err (!%p1021_p7)
}
 0x1d4   : > { %821 = dma.vmem_to_hbm [thread:$0]  (%p1233_p9), %s654_s13, 128, %s1274_s6, [#allocation8]  }
 0x1d5 PF: > { %p843_p8 = scmp.eq.s32.totalorder %s784_s26, 1  ;;  %p1287_p13 = scmp.ge.s32.totalorder %s1067_s25, 2 }
 0x1d7   : > { %p833_p0 = pnand %p843_p8, %p1287_p13 }
 0x1d9   : > { %1054 = dma.done.wait (!%p833_p0), [#allocation8], 128  }
 0x1da   : > { %1056 = vsyncadd (!%p833_p0), [#allocation8], 4294967168  ;;  %s25_s25 = sadd.s32 1, %s1067_s25   ;;  %s1288_s23 = smov %s1063_s24 }
 0x1db   : > { %p22_p1 = scmp.ge.s32.totalorder %s25_s25, 4   ;;  %s1289_s24 = smov %s1291_s27 }
 0x1dd   :  { %24 = sbr.rel (!%p22_p1) target bundleno = 9 (0x9), region = 155 }
 0x1e4   :  { %671 = vsyncpa [#allocation7], 1 }
 0x1e5   :  { %673 = vsyncpa [#allocation7 + $0x1], 1 }
 0x1e6   :  { %674 = vsyncpa [#allocation10], 1 }
 0x1e7   :  { %676 = vsyncpa [#allocation10 + $0x1], 1 }
 0x1e8   :  { %677 = vsyncpa [#allocation8], 1 }
 0x1e9   :  { %679 = vsyncpa [#allocation8 + $0x1], 1 }

</bundles_post_ra>
